<compile_context>
chip_gen: v7x
topology: tpu7x:2x2x1
jax: 0.10.0
libtpu: 0.0.40
codegen_flags: <defaults>
</compile_context>

<pallas_src>
import jax
import jax.numpy as jnp
from jax.experimental import pallas as pl
from jax.experimental.pallas import tpu as pltpu


def _round_up(n, m):
    return ((n + m - 1) // m) * m


def actor_forward_kernel(x_ref, w1_ref, b1_ref, w2_ref, b2_ref, probs_ref):
    # fc1: bf16 MXU matmul, f32 accumulation, bias add + ReLU in f32.
    h = jnp.dot(x_ref[...], w1_ref[...], preferred_element_type=jnp.float32)
    h = jnp.maximum(h + b1_ref[...], 0.0)

    # fc2: bf16 MXU matmul, f32 accumulation, bias add in f32.
    logits = jnp.dot(h.astype(jnp.bfloat16), w2_ref[...],
                     preferred_element_type=jnp.float32)
    logits = logits + b2_ref[...]          # padded lanes get -1e30 -> exp() == 0

    # Numerically-stable softmax over the action (lane) axis == PyTorch dim=1.
    m = jnp.max(logits, axis=-1, keepdims=True)
    e = jnp.exp(logits - m)
    denom = jnp.sum(e, axis=-1, keepdims=True)
    probs_ref[...] = (e / denom).astype(probs_ref.dtype)   # exact: rows sum to 1


def _actor_forward_padded(x, w1_bf, b1, w2_bf, b2, *, batch_tile):
    """Run the kernel on a batch padded to a tile multiple; returns (B_pad, A_pad)."""
    B, F = x.shape
    H = w1_bf.shape[1]
    Ap = w2_bf.shape[1]

    # Batch tile: multiple of 8 (sublane), capped at batch_tile; for larger
    # batches aim for >= 2 grid steps so v7x's two TensorCores both get work.
    tile = min(batch_tile, max(8, _round_up(pl.cdiv(B, 2), 8)))
    B_pad = _round_up(B, tile)
    nb = B_pad // tile

    x_bf = x.astype(jnp.bfloat16)
    if B_pad != B:
        x_bf = jnp.pad(x_bf, ((0, B_pad - B), (0, 0)))

    cost = pl.CostEstimate(
        flops=2 * B_pad * (F * H + H * Ap),
        transcendentals=B_pad * Ap,
        bytes_accessed=(2 * (x_bf.size + w1_bf.size + w2_bf.size)
                        + 4 * (B_pad * Ap + H + Ap)),
    )

    return pl.pallas_call(
        actor_forward_kernel,
        out_shape=jax.ShapeDtypeStruct((B_pad, Ap), jnp.float32),
        grid=(nb,),
        in_specs=[
            pl.BlockSpec((tile, F), lambda i: (i, 0)),   # per-tile activations
            pl.BlockSpec((F, H), lambda i: (0, 0)),      # weights stay resident
            pl.BlockSpec((1, H), lambda i: (0, 0)),
            pl.BlockSpec((H, Ap), lambda i: (0, 0)),
            pl.BlockSpec((1, Ap), lambda i: (0, 0)),
        ],
        out_specs=pl.BlockSpec((tile, Ap), lambda i: (i, 0)),
        compiler_params=pltpu.CompilerParams(
            dimension_semantics=("parallel",)),
        cost_estimate=cost,
    )(x_bf, w1_bf, b1, w2_bf, b2)


def make_actor_forward(w1, b1, w2, b2, *, batch_tile=512, lane=128):
    """Prepare weights once (bf16 cast + lane padding); return jitted forward(x)."""
    F, H = w1.shape
    A = w2.shape[1]
    assert b1.shape == (1, H) and b2.shape == (1, A)
    Ap = _round_up(max(A, lane), lane)

    # One-time host-side prep (hoisted out of the per-call path).
    w1_bf = w1.astype(jnp.bfloat16)                                   # (F, H)
    b1_f = b1.astype(jnp.float32)                                     # (1, H)
    w2_bf = jnp.pad(w2.astype(jnp.bfloat16), ((0, 0), (0, Ap - A)))   # (H, Ap)
    b2_f = jnp.pad(b2.astype(jnp.float32), ((0, 0), (0, Ap - A)),
                   constant_values=-1e30)                             # (1, Ap)

    @jax.jit
    def forward(x):
        probs_pad = _actor_forward_padded(x, w1_bf, b1_f, w2_bf, b2_f,
                                          batch_tile=batch_tile)
        return probs_pad[:x.shape[0], :A]

    return forward


# ----------------------------- references -----------------------------------

def actor_forward_ref_bf16(x, w1, b1, w2, b2):
    """Pure-JAX reference with the same bf16 matmul inputs as the kernel."""
    h = jnp.dot(x.astype(jnp.bfloat16), w1.astype(jnp.bfloat16),
                preferred_element_type=jnp.float32) + b1
    h = jnp.maximum(h, 0.0)
    logits = jnp.dot(h.astype(jnp.bfloat16), w2.astype(jnp.bfloat16),
                     preferred_element_type=jnp.float32) + b2
    return jax.nn.softmax(logits, axis=1)


def actor_forward_ref_f32(x, w1, b1, w2, b2):
    """Full-precision reference of the PyTorch forward pass."""
    h = jnp.maximum(x @ w1 + b1, 0.0)
    return jax.nn.softmax(h @ w2 + b2, axis=1)


def init_actor_params(key, n_feature, n_action, hidden=1024):
    # Roughly PyTorch's U(-1/sqrt(fan_in), 1/sqrt(fan_in)) init, deterministic.
    k1, k2, k3, k4 = jax.random.split(key, 4)
    bound1 = 1.0 / jnp.sqrt(n_feature)
    bound2 = 1.0 / jnp.sqrt(hidden)
    w1 = jax.random.uniform(k1, (n_feature, hidden), jnp.float32, -bound1, bound1)
    b1 = jax.random.uniform(k2, (1, hidden), jnp.float32, -bound1, bound1)
    w2 = jax.random.uniform(k3, (hidden, n_action), jnp.float32, -bound2, bound2)
    b2 = jax.random.uniform(k4, (1, n_action), jnp.float32, -bound2, bound2)
    return w1, b1, w2, b2


# TODO(synk): choose_action / learn are host-side numpy sampling + scalar loss; not kernelized.

if __name__ == "__main__":
    key = jax.random.PRNGKey(0)
    kx, kb, kp = jax.random.split(key, 3)

    n_feature = 32   # state feature size
    n_action = 8     # number of discrete actions
    w1, b1, w2, b2 = init_actor_params(kp, n_feature, n_action)

    forward = make_actor_forward(w1, b1, w2, b2)

    # --- small batch (matches the original demo usage: a couple of states) ---
    B = 2
    x = jax.random.normal(kx, (B, n_feature), jnp.float32)
    probs = jax.block_until_ready(forward(x))

    ref_bf16 = actor_forward_ref_bf16(x, w1, b1, w2, b2)
    ref_f32 = actor_forward_ref_f32(x, w1, b1, w2, b2)
    assert probs.shape == (B, n_action)
    assert bool(jnp.all(jnp.isfinite(probs)))
    assert jnp.allclose(jnp.sum(probs, axis=1), 1.0, atol=1e-3)
    assert jnp.allclose(probs, ref_bf16, atol=2e-3, rtol=2e-3)
    assert jnp.allclose(probs, ref_f32, atol=1e-2)

    # --- larger batch (batch axis tiled; "parallel" lets v7x split across TCs) ---
    Bb = 500   # deliberately not a tile multiple: exercises cdiv grid + padding
    xb = jax.random.normal(kb, (Bb, n_feature), jnp.float32)
    probs_b = jax.block_until_ready(forward(xb))

    ref_b = actor_forward_ref_bf16(xb, w1, b1, w2, b2)
    assert probs_b.shape == (Bb, n_action)
    assert jnp.allclose(jnp.sum(probs_b, axis=1), 1.0, atol=1e-3)
    assert jnp.allclose(probs_b, ref_b, atol=2e-3, rtol=2e-3)

    print("KERNEL_OK")
</pallas_src>

<mosaic_0001>
module attributes {stable_mosaic.version = 11 : i64} {
  func.func @actor_forward_kernel(%arg0: i32, %arg1: memref<8x32xbf16, #tpu.memory_space<vmem>>, %arg2: memref<32x1024xbf16, #tpu.memory_space<vmem>>, %arg3: memref<1x1024xf32, #tpu.memory_space<vmem>>, %arg4: memref<1024x128xbf16, #tpu.memory_space<vmem>>, %arg5: memref<1x128xf32, #tpu.memory_space<vmem>>, %arg6: memref<8x128xf32, #tpu.memory_space<vmem>>) attributes {dimension_semantics = [#tpu.dimension_semantics<parallel>], iteration_bounds = array<i64: 1>, scalar_prefetch = 0 : i64, scratch_operands = 0 : i64, tpu.core_type = #tpu.core_type<tc>, window_params = [{transform_indices = @transform_0, window_bounds = array<i64: 8, 32>}, {pipeline_mode = #tpu.pipeline_mode<synchronous>, transform_indices = @transform_1, window_bounds = array<i64: 32, 1024>}, {pipeline_mode = #tpu.pipeline_mode<synchronous>, transform_indices = @transform_2, window_bounds = array<i64: 1, 1024>}, {pipeline_mode = #tpu.pipeline_mode<synchronous>, transform_indices = @transform_3, window_bounds = array<i64: 1024, 128>}, {pipeline_mode = #tpu.pipeline_mode<synchronous>, transform_indices = @transform_4, window_bounds = array<i64: 1, 128>}, {transform_indices = @transform_5, window_bounds = array<i64: 8, 128>}]} {
    %c0 = arith.constant 0 : index
    %c0_0 = arith.constant 0 : index
    %0 = vector.load %arg1[%c0, %c0_0] : memref<8x32xbf16, #tpu.memory_space<vmem>>, vector<8x32xbf16>
    %c0_1 = arith.constant 0 : index
    %c0_2 = arith.constant 0 : index
    %1 = vector.load %arg2[%c0_1, %c0_2] : memref<32x1024xbf16, #tpu.memory_space<vmem>>, vector<32x1024xbf16>
    %cst = arith.constant dense<0.000000e+00> : vector<8x1024xf32>
    %2 = tpu.matmul %0, %1, %cst {dimension_numbers = #tpu.dot_dimension_numbers<[1], [0], [0], [1], [0, 0, 1, 1], [], []>} : vector<8x32xbf16>, vector<32x1024xbf16>, vector<8x1024xf32> -> vector<8x1024xf32>
    %c0_3 = arith.constant 0 : index
    %c0_4 = arith.constant 0 : index
    %3 = vector.load %arg3[%c0_3, %c0_4] : memref<1x1024xf32, #tpu.memory_space<vmem>>, vector<1x1024xf32>
    %4 = vector.broadcast %3 : vector<1x1024xf32> to vector<8x1024xf32>
    %5 = arith.addf %2, %4 : vector<8x1024xf32>
    %cst_5 = arith.constant 0.000000e+00 : f32
    %6 = vector.broadcast %cst_5 : f32 to vector<8x1024xf32>
    %7 = arith.maximumf %5, %6 : vector<8x1024xf32>
    %8 = arith.truncf %7 : vector<8x1024xf32> to vector<8x1024xbf16>
    %c0_6 = arith.constant 0 : index
    %c0_7 = arith.constant 0 : index
    %9 = vector.load %arg4[%c0_6, %c0_7] : memref<1024x128xbf16, #tpu.memory_space<vmem>>, vector<1024x128xbf16>
    %cst_8 = arith.constant dense<0.000000e+00> : vector<8x128xf32>
    %10 = tpu.matmul %8, %9, %cst_8 {dimension_numbers = #tpu.dot_dimension_numbers<[1], [0], [0], [1], [0, 0, 1, 1], [], []>} : vector<8x1024xbf16>, vector<1024x128xbf16>, vector<8x128xf32> -> vector<8x128xf32>
    %c0_9 = arith.constant 0 : index
    %c0_10 = arith.constant 0 : index
    %11 = vector.load %arg5[%c0_9, %c0_10] : memref<1x128xf32, #tpu.memory_space<vmem>>, vector<1x128xf32>
    %12 = vector.broadcast %11 : vector<1x128xf32> to vector<8x128xf32>
    %13 = arith.addf %10, %12 : vector<8x128xf32>
    %cst_11 = arith.constant dense<0xFF800000> : vector<8xf32>
    %14 = vector.multi_reduction <maximumf>, %13, %cst_11 [1] : vector<8x128xf32> to vector<8xf32>
    %15 = vector.shape_cast %14 : vector<8xf32> to vector<8x1xf32>
    %16 = vector.broadcast %15 : vector<8x1xf32> to vector<8x128xf32>
    %17 = arith.subf %13, %16 : vector<8x128xf32>
    %18 = math.exp %17 : vector<8x128xf32>
    %cst_12 = arith.constant dense<0.000000e+00> : vector<8xf32>
    %19 = vector.multi_reduction <add>, %18, %cst_12 [1] : vector<8x128xf32> to vector<8xf32>
    %20 = vector.shape_cast %19 : vector<8xf32> to vector<8x1xf32>
    %21 = vector.broadcast %20 : vector<8x1xf32> to vector<8x128xf32>
    %22 = arith.divf %18, %21 : vector<8x128xf32>
    %c0_13 = arith.constant 0 : index
    %c0_14 = arith.constant 0 : index
    %23 = vector.load %arg6[%c0_13, %c0_14] : memref<8x128xf32, #tpu.memory_space<vmem>>, vector<8x128xf32>
    tpu.vector_store %arg6[%c0_13, %c0_14], %22 {strides = array<i32>} : memref<8x128xf32, #tpu.memory_space<vmem>>, vector<8x128xf32>,
    return
  }
  func.func @transform_0(%arg0: i32) -> (i32, i32) {
    %c0_i32 = arith.constant 0 : i32
    %c0_i32_0 = arith.constant 0 : i32
    return %arg0, %c0_i32 : i32, i32
  }
  func.func @transform_1(%arg0: i32) -> (i32, i32) {
    %c0_i32 = arith.constant 0 : i32
    %c0_i32_0 = arith.constant 0 : i32
    %c0_i32_1 = arith.constant 0 : i32
    return %c0_i32, %c0_i32_0 : i32, i32
  }
  func.func @transform_2(%arg0: i32) -> (i32, i32) {
    %c0_i32 = arith.constant 0 : i32
    %c0_i32_0 = arith.constant 0 : i32
    %c0_i32_1 = arith.constant 0 : i32
    return %c0_i32, %c0_i32_0 : i32, i32
  }
  func.func @transform_3(%arg0: i32) -> (i32, i32) {
    %c0_i32 = arith.constant 0 : i32
    %c0_i32_0 = arith.constant 0 : i32
    %c0_i32_1 = arith.constant 0 : i32
    return %c0_i32, %c0_i32_0 : i32, i32
  }
  func.func @transform_4(%arg0: i32) -> (i32, i32) {
    %c0_i32 = arith.constant 0 : i32
    %c0_i32_0 = arith.constant 0 : i32
    %c0_i32_1 = arith.constant 0 : i32
    return %c0_i32, %c0_i32_0 : i32, i32
  }
  func.func @transform_5(%arg0: i32) -> (i32, i32) {
    %c0_i32 = arith.constant 0 : i32
    %c0_i32_0 = arith.constant 0 : i32
    return %arg0, %c0_i32 : i32, i32
  }
}

</mosaic_0001>

<bundles_post_ra>
// kernel: forward.1
= control target key start
LH: loop header
LB: loop body
LE: loop exit
PB: predicated region body
PF: predicated region fallthrough
CT: control target
= control target key end

     0   :  { %10 = vsyncpa [#allocation3], 0  ;;  %s1321_s18 = smov [#allocation2]   ;;  %s1454_s0 = inlined_call_operand.vmem [shape: bf16[8,32], index: 0, kind: input, shape index: {}]   ;;  %s1455_s1 = inlined_call_operand.vmem [shape: bf16[32,1024], index: 1, kind: input, shape index: {}]   ;;  %s1456_s2 = inlined_call_operand.vmem [shape: f32[1,1024], index: 2, kind: input, shape index: {}]   ;;  %s1457_s3 = inlined_call_operand.hbm [shape: bf16[1024,128], index: 3, kind: input, shape index: {}]   ;;  %s1458_s4 = inlined_call_operand.vmem [shape: f32[1,128], index: 4, kind: input, shape index: {}]   ;;  %s1459_s5 = inlined_call_operand.vmem [shape: f32[8,128], index: 5, kind: output, shape index: {}]  }
   0x1   :  { %s22_s19 = sshll.u32 %s1321_s18, 4  ;;  %s1297_s22 = scalar_lea.hbm %s1457_s3, 8192  ;;  %s23_s19 = int_to_ptr.vmem [resolvable:$true] %s22_s19 }
   0x2   :  { %p1298_p0 = scmp.ne.s32.totalorder %s1457_s3, %s1297_s22  ;;  %p1301_p1 = scmp.lt.u32.totalorder %s1297_s22, %s1457_s3 }
   0x4   :  { %p1303_p2 = pnand %p1301_p1, %p1298_p0 }
   0x6   :  { %1306 = shalt.err (!%p1303_p2)
}
   0x7   :  { %s1307_s27 = scalar_lea.vmem %s23_s19, 8192  ;;  %p1312_p4 = scmp.lt.s32.totalorder %s23_s19, %s23_s19 }
   0x8   :  { %p1308_p3 = scmp.ne.s32.totalorder %s23_s19, %s1307_s27  ;;  %p1313_p5 = scmp.lt.s32.totalorder %s1307_s27, %s1307_s27 }
   0xa   :  { %p1314_p6 = por %p1313_p5, %p1312_p4 }
   0xc   :  { %p1315_p7 = pnand %p1314_p6, %p1308_p3 }
   0xe   :  { %1318 = shalt.err (!%p1315_p7)
}
   0xf   :  { %s1322_s28 = smov 64   ;;  %s1323_s29 = smov 4  }
  0x10   :  { %28 = dma.hbm_to_vmem [thread:$0]  %s1457_s3, 8192, %s23_s19, [#allocation3], %s1322_s28, %s1322_s28, %s1323_s29  }
  0x11   :  { %1319 = dma.done.wait [#allocation3], 8192  }
  0x12   :  { %1320 = vsyncadd [#allocation3], 4294959104  ;;  %v1324_v0 = vmov 0   ;;  %v36_v1 = vld [vmem:[%s1455_s1] sm:$0xff]  ;;  %v37_v3 = vld [vmem:[%s1455_s1 + $0x8] sm:$0xff]  ;;  %vm174_vm0 = vcmask 261120  }
  0x13   :  { %210 = vmatprep.mubr.bf16.mxu0 %v1324_v0  ;;  %251 = vmatprep.mubr.bf16.mxu1 %v1324_v0  ;;  %v40_v2 = vld [vmem:[%s1455_s1 + $0x20] sm:$0xff]  ;;  %v41_v5 = vld [vmem:[%s1455_s1 + $0x28] sm:$0xff]  ;;  %v38_v15 = vld [vmem:[%s1455_s1 + $0x10] sm:$0xff] }
  0x14   :  { %v1053_v4 = vcombine.high %v36_v1, %v40_v2  ;;  %v1052_v6 = vcombine.low %v36_v1, %v40_v2  ;;  %v44_v7 = vld [vmem:[%s1455_s1 + $0x40] sm:$0xff]  ;;  %v1055_v9 = vcombine.high %v37_v3, %v41_v5  ;;  %v1054_v10 = vcombine.low %v37_v3, %v41_v5  ;;  %v45_v12 = vld [vmem:[%s1455_s1 + $0x48] sm:$0xff]  ;;  %v42_v16 = vld [vmem:[%s1455_s1 + $0x30] sm:$0xff] }
  0x15   :  { %v48_v8 = vld [vmem:[%s1455_s1 + $0x60] sm:$0xff]  ;;  %v49_v13 = vld [vmem:[%s1455_s1 + $0x68] sm:$0xff]  ;;  %v39_v17 = vld [vmem:[%s1455_s1 + $0x18] sm:$0xff]  ;;  %v1057_v21 = vcombine.high %v38_v15, %v42_v16  ;;  %v1056_v28 = vcombine.low %v38_v15, %v42_v16 }
  0x16   :  { %v1061_v11 = vcombine.high %v44_v7, %v48_v8  ;;  %178 = vmatprep.subr.bf16.mxu0 %v1053_v4  ;;  %v1063_v14 = vcombine.high %v45_v12, %v49_v13  ;;  %219 = vmatprep.subr.bf16.mxu1 %v1055_v9  ;;  %v1060_v18 = vcombine.low %v44_v7, %v48_v8  ;;  %v43_v19 = vld [vmem:[%s1455_s1 + $0x38] sm:$0xff]  ;;  %v46_v22 = vld [vmem:[%s1455_s1 + $0x50] sm:$0xff]  ;;  %v35_v27 = vld [vmem:[%s1454_s0] sm:$0xf]  ;;  %v54_v4 = vlaneseq }
  0x17   :  { %179 = vmatpush1.bf16.msra.mxu0 %v1052_v6  ;;  %220 = vmatpush1.bf16.msra.mxu1 %v1054_v10  ;;  %v1062_v20 = vcombine.low %v45_v12, %v49_v13  ;;  %v50_v23 = vld [vmem:[%s1455_s1 + $0x70] sm:$0xff]  ;;  %v1059_v24 = vcombine.high %v39_v17, %v43_v19  ;;  %v47_v25 = vld [vmem:[%s1455_s1 + $0x58] sm:$0xff]  ;;  %v1058_v29 = vcombine.low %v39_v17, %v43_v19  ;;  %v1229_v34 = vld [vmem:[#allocation2 + $0x40] sm:$0xff]  }
  0x18   :  { %180 = vmatprep.subr.bf16.mxu0 %v1061_v11  ;;  %221 = vmatprep.subr.bf16.mxu1 %v1063_v14  ;;  %v51_v26 = vld [vmem:[%s1455_s1 + $0x78] sm:$0xff]  ;;  %v1065_v30 = vcombine.high %v46_v22, %v50_v23  ;;  %v1064_v32 = vcombine.low %v46_v22, %v50_v23  ;;  %v1230_v35 = vld [vmem:[#allocation2 + $0xc0] sm:$0xff]   ;;  %v1233_v38 = vld [vmem:[#allocation2 + $0x48] sm:$0xff]   ;;  %v1422_v5 = vshrl.u32 %v54_v4, 7 }
  0x19   :  { %v1067_v31 = vcombine.high %v47_v25, %v51_v26  ;;  %v1066_v33 = vcombine.low %v47_v25, %v51_v26  ;;  %v1231_v36 = vld [vmem:[#allocation2] sm:$0xff]   ;;  %v1234_v39 = vld [vmem:[#allocation2 + $0xc8] sm:$0xff]   ;;  %v1237_v42 = vld [vmem:[#allocation2 + $0x50] sm:$0xff]  }
  0x1a   :  { %v1232_v37 = vld [vmem:[#allocation2 + $0x80] sm:$0xff]   ;;  %v1235_v40 = vld [vmem:[#allocation2 + $0x8] sm:$0xff]   ;;  %v1238_v43 = vld [vmem:[#allocation2 + $0xd0] sm:$0xff]   ;;  %v56_v6 = vsub.s32 0, %v1422_v5  ;;  %v64_v8 = vsub.s32 2, %v1422_v5  ;;  %v60_v9 = vsub.s32 1, %v1422_v5 }
  0x1b   :  { %181 = vmatpush1.bf16.msra.mxu0 %v1060_v18  ;;  %222 = vmatpush1.bf16.msra.mxu1 %v1062_v20  ;;  %v1236_v41 = vld [vmem:[#allocation2 + $0x88] sm:$0xff]   ;;  %v1239_v44 = vld [vmem:[#allocation2 + $0x10] sm:$0xff]   ;;  %v1241_v46 = vld [vmem:[#allocation2 + $0x58] sm:$0xff]   ;;  %v68_v10 = vsub.s32 3, %v1422_v5  ;;  %v76_v23 = vsub.s32 5, %v1422_v5 }
  0x1c   :  { %260 = vmatprep.subr.bf16.mxu0 %v1057_v21  ;;  %301 = vmatprep.subr.bf16.mxu1 %v1059_v24  ;;  %v1240_v45 = vld [vmem:[#allocation2 + $0x90] sm:$0xff]   ;;  %v1242_v47 = vld [vmem:[#allocation2 + $0xd8] sm:$0xff]   ;;  %v1245_v50 = vld [vmem:[#allocation2 + $0x60] sm:$0xff]  }
  0x1d   :  { %v1243_v48 = vld [vmem:[#allocation2 + $0x18] sm:$0xff]   ;;  %v1246_v51 = vld [vmem:[#allocation2 + $0xe0] sm:$0xff]   ;;  %v1249_v54 = vld [vmem:[#allocation2 + $0x68] sm:$0xff]  }
  0x1e   :  { %1068 = vmatmul.mubr.msk.bf16.vlgmr.msra.gmra.mrb[0].mxu0 %vm174_vm0, %v35_v27  ;;  %1069 = vmatmul.mubr.msk.bf16.vlgmr.msra.gmra.mrb[0].mxu1 %vm174_vm0, %v35_v27  ;;  %v1244_v49 = vld [vmem:[#allocation2 + $0x98] sm:$0xff]   ;;  %v1247_v52 = vld [vmem:[#allocation2 + $0x20] sm:$0xff]   ;;  %v1250_v55 = vld [vmem:[#allocation2 + $0xe8] sm:$0xff]  }
  0x1f   :  { %261 = vmatpush1.bf16.msra.mxu0 %v1056_v28  ;;  %302 = vmatpush1.bf16.msra.mxu1 %v1058_v29  ;;  %v1248_v53 = vld [vmem:[#allocation2 + $0xa0] sm:$0xff]   ;;  %v1251_v56 = vld [vmem:[#allocation2 + $0x28] sm:$0xff]   ;;  %v1253_v58 = vld [vmem:[#allocation2 + $0x70] sm:$0xff]   ;;  %v84_v28 = vsub.s32 7, %v1422_v5 }
  0x20   :  { %262 = vmatprep.subr.bf16.mxu0 %v1065_v30  ;;  %303 = vmatprep.subr.bf16.mxu1 %v1067_v31  ;;  %v1252_v57 = vld [vmem:[#allocation2 + $0xa8] sm:$0xff]   ;;  %v1254_v59 = vld [vmem:[#allocation2 + $0xf0] sm:$0xff]   ;;  %v1257_v62 = vld [vmem:[#allocation2 + $0x78] sm:$0xff]  }
  0x21   :  { %292 = vmatprep.mubr.bf16.mxu0 %v1324_v0  ;;  %333 = vmatprep.mubr.bf16.mxu1 %v1324_v0  ;;  %v1255_v60 = vld [vmem:[#allocation2 + $0x30] sm:$0xff]   ;;  %v1258_v63 = vld [vmem:[#allocation2 + $0xf8] sm:$0xff]   ;;  %v1261_v2 = vld [vmem:[#allocation2 + $0x140] sm:$0xff]  }
  0x22   :  { %v1256_v61 = vld [vmem:[#allocation2 + $0xb0] sm:$0xff]   ;;  %v1259_v0 = vld [vmem:[#allocation2 + $0x38] sm:$0xff]   ;;  %v1262_v3 = vld [vmem:[#allocation2 + $0x1c0] sm:$0xff]  }
  0x23   :  { %263 = vmatpush1.bf16.msra.mxu0 %v1064_v32  ;;  %304 = vmatpush1.bf16.msra.mxu1 %v1066_v33  ;;  %v1260_v1 = vld [vmem:[#allocation2 + $0xb8] sm:$0xff]   ;;  %v1428_v7 = vld [vmem:[%s1456_s2] sm:$0xff] }
  0x24   :  { %1137 = vmatprep.subr.bf16.mxu0 %v1229_v34  ;;  %1159 = vmatprep.subr.bf16.mxu1 %v1230_v35  ;;  %v57_v11 = vrot.slane %v1428_v7, %v56_v6  ;;  %v65_v12 = vrot.slane %v1428_v7, %v64_v8  ;;  %v61_v13 = vrot.slane %v1428_v7, %v60_v9  ;;  %v1263_v35 = vld [vmem:[#allocation2 + $0x100] sm:$0xff]   ;;  %v80_v8 = vsub.s32 6, %v1422_v5 }
  0x25   :  { %v69_v14 = vrot.slane %v1428_v7, %v68_v10  ;;  %v1278_v4 = vld [vmem:[#allocation2 + $0x1e0] sm:$0xff]   ;;  %v72_v10 = vsub.s32 4, %v1422_v5 }
  0x26   :  { %1070 = vmatmul.mubr.msk.bf16.vlgmr.msra.gmra.mrb[4].mxu0 %vm174_vm0, %v35_v27  ;;  %1071 = vmatmul.mubr.msk.bf16.vlgmr.msra.gmra.mrb[4].mxu1 %vm174_vm0, %v35_v27  ;;  %v1279_v6 = vld [vmem:[#allocation2 + $0x120] sm:$0xff]  }
  0x27   :  { %1138 = vmatpush3.bf16.msra.mxu0 %v1231_v36  ;;  %1160 = vmatpush3.bf16.msra.mxu1 %v1232_v37  ;;  %v77_v36 = vrot.slane %v1428_v7, %v76_v23  ;;  %v1280_v9 = vld [vmem:[#allocation2 + $0x1a0] sm:$0xff]   ;;  %v1290_v23 = vld [vmem:[#allocation2 + $0x1f8] sm:$0xff]  }
  0x28   :  { %1139 = vmatprep.subr.bf16.mxu0 %v1233_v38  ;;  %1161 = vmatprep.subr.bf16.mxu1 %v1234_v39  ;;  %v1264_v39 = vld [vmem:[#allocation2 + $0x180] sm:$0xff]  }
  0x2b   :  { %1140 = vmatpush3.bf16.msra.mxu0 %v1235_v40  ;;  %1162 = vmatpush3.bf16.msra.mxu1 %v1236_v41  ;;  %v1265_v40 = vld [vmem:[#allocation2 + $0x148] sm:$0xff]   ;;  %v85_v41 = vrot.slane %v1428_v7, %v84_v28 }
  0x2c   :  { %1141 = vmatprep.subr.bf16.mxu0 %v1237_v42  ;;  %1163 = vmatprep.subr.bf16.mxu1 %v1238_v43  ;;  %v1266_v42 = vld [vmem:[#allocation2 + $0x1c8] sm:$0xff]  }
  0x2f   :  { %1142 = vmatpush3.bf16.msra.mxu0 %v1239_v44  ;;  %1164 = vmatpush3.bf16.msra.mxu1 %v1240_v45 }
  0x30   :  { %1143 = vmatprep.subr.bf16.mxu0 %v1241_v46  ;;  %1165 = vmatprep.subr.bf16.mxu1 %v1242_v47  ;;  %v1267_v46 = vld [vmem:[#allocation2 + $0x108] sm:$0xff]  }
  0x33   :  { %1144 = vmatpush3.bf16.msra.mxu0 %v1243_v48  ;;  %1166 = vmatpush3.bf16.msra.mxu1 %v1244_v49 }
  0x34   :  { %1145 = vmatprep.subr.bf16.mxu0 %v1245_v50  ;;  %1167 = vmatprep.subr.bf16.mxu1 %v1246_v51  ;;  %v1268_v50 = vld [vmem:[#allocation2 + $0x188] sm:$0xff]   ;;  %v1269_v51 = vld [vmem:[#allocation2 + $0x150] sm:$0xff]  }
  0x37   :  { %1146 = vmatpush3.bf16.msra.mxu0 %v1247_v52  ;;  %1168 = vmatpush3.bf16.msra.mxu1 %v1248_v53 }
  0x38   :  { %1147 = vmatprep.subr.bf16.mxu0 %v1249_v54  ;;  %1169 = vmatprep.subr.bf16.mxu1 %v1250_v55  ;;  %v1270_v55 = vld [vmem:[#allocation2 + $0x1d0] sm:$0xff]  }
  0x3b   :  { %1148 = vmatpush3.bf16.msra.mxu0 %v1251_v56  ;;  %1170 = vmatpush3.bf16.msra.mxu1 %v1252_v57 }
  0x3c   :  { %1149 = vmatprep.subr.bf16.mxu0 %v1253_v58  ;;  %1171 = vmatprep.subr.bf16.mxu1 %v1254_v59  ;;  %v1271_v59 = vld [vmem:[#allocation2 + $0x110] sm:$0xff]  }
  0x3f   :  { %1150 = vmatpush3.bf16.msra.mxu0 %v1255_v60  ;;  %1172 = vmatpush3.bf16.msra.mxu1 %v1256_v61  ;;  %v1272_v61 = vld [vmem:[#allocation2 + $0x190] sm:$0xff]  }
  0x40   :  { %1151 = vmatprep.subr.bf16.mxu0 %v1257_v62  ;;  %1173 = vmatprep.subr.bf16.mxu1 %v1258_v63  ;;  %v1273_v62 = vld [vmem:[#allocation2 + $0x158] sm:$0xff]  }
  0x43   :  { %1152 = vmatpush3.bf16.msra.mxu0 %v1259_v0  ;;  %1174 = vmatpush3.bf16.msra.mxu1 %v1260_v1  ;;  %v1274_v0 = vld [vmem:[#allocation2 + $0x1d8] sm:$0xff]  }
  0x44   :  { %1181 = vmatprep.subr.bf16.mxu0 %v1261_v2  ;;  %1203 = vmatprep.subr.bf16.mxu1 %v1262_v3  ;;  %v1275_v1 = vld [vmem:[#allocation2 + $0x118] sm:$0xff]   ;;  %v1277_v3 = vld [vmem:[#allocation2 + $0x160] sm:$0xff]  }
  0x45   :  { %v1276_v2 = vld [vmem:[#allocation2 + $0x198] sm:$0xff]  }
  0xf1   :  { %v212_v15 = vpop.f32.mrb[0].mxu0  ;;  %v253_v17 = vpop.f32.mrb[0].mxu1 }
  0xf2   :  { %v213_v16 = vadd.f32 %v212_v15, %v57_v11  ;;  %v214_v18 = vpop.f32.mrb[1].mxu0  ;;  %v254_v19 = vadd.f32 %v253_v17, %v65_v12  ;;  %v255_v21 = vpop.f32.mrb[1].mxu1  ;;  %v1281_v11 = vld [vmem:[#allocation2 + $0x168] sm:$0xff]   ;;  %v73_v15 = vrot.slane %v1428_v7, %v72_v10  ;;  %v1285_v17 = vld [vmem:[#allocation2 + $0x170] sm:$0xff]  }
  0xf3   :  { %v215_v20 = vadd.f32 %v214_v18, %v61_v13  ;;  %v216_v22 = vpop.f32.mrb[2].mxu0  ;;  %v256_v25 = vadd.f32 %v255_v21, %v69_v14  ;;  %v257_v26 = vpop.f32.mrb[2].mxu1  ;;  %v1282_v12 = vld [vmem:[#allocation2 + $0x1e8] sm:$0xff]   ;;  %v81_v14 = vrot.slane %v1428_v7, %v80_v8  ;;  %v1286_v18 = vld [vmem:[#allocation2 + $0x1f0] sm:$0xff]  }
  0xf4   :  { %v342_v24 = vmax.f32 %v213_v16, 0.0  ;;  %v217_v27 = vpop.f32.mrb[3].mxu0  ;;  %v344_v29 = vmax.f32 %v254_v19, 0.0  ;;  %v258_v31 = vpop.f32.mrb[3].mxu1  ;;  %v1283_v13 = vld [vmem:[#allocation2 + $0x128] sm:$0xff]   ;;  %v1288_v21 = vld [vmem:[#allocation2 + $0x1b0] sm:$0xff]  }
  0xf5   :  { %v343_v30 = vmax.f32 %v215_v20, 0.0  ;;  %v345_v32 = vmax.f32 %v256_v25, 0.0  ;;  %v1284_v16 = vld [vmem:[#allocation2 + $0x1a8] sm:$0xff]   ;;  %v1287_v20 = vld [vmem:[#allocation2 + $0x130] sm:$0xff]   ;;  %v1289_v22 = vld [vmem:[#allocation2 + $0x178] sm:$0xff]  }
  0xf6   :  { %v352_v33 = vpack.c.bf16 %v344_v29, %v344_v29  ;;  %v350_v37 = vpack.c.bf16 %v342_v24, %v342_v24  ;;  %v1291_v25 = vld [vmem:[#allocation2 + $0x138] sm:$0xff]   ;;  %v1072_v31 = vld [vmem:[%s1458_s4] ss:$0 sm:$0xff] }
  0xf7   :  { %v351_v34 = vpack.c.bf16 %v343_v30, %v343_v30  ;;  %v353_v38 = vpack.c.bf16 %v345_v32, %v345_v32  ;;  %v1292_v26 = vld [vmem:[#allocation2 + $0x1b8] sm:$0xff]  }
  0xf9   :  { %909 = vmatprep.mubr.bf16.mxu0 %v351_v34  ;;  %v1441_v43 = vpop.f32.mrb[4].mxu0  ;;  %949 = vmatprep.mubr.bf16.mxu1 %v353_v38  ;;  %v335_v45 = vpop.f32.mrb[4].mxu1 }
  0xfa   :  { %910 = vmatmul.mubr.bf16.vlgmr.msra.gmra.mrb[8].mxu0 %v350_v37  ;;  %v296_v44 = vpop.f32.mrb[5].mxu0  ;;  %950 = vmatmul.mubr.bf16.vlgmr.msra.gmra.mrb[8].mxu1 %v352_v33  ;;  %v337_v49 = vpop.f32.mrb[5].mxu1  ;;  %v336_v19 = vadd.f32 %v335_v45, %v81_v14  ;;  %v295_v5 = vadd.f32 %v1441_v43, %v73_v15 }
  0xfb   :  { %1182 = vmatpush3.bf16.msra.mxu0 %v1263_v35  ;;  %v297_v47 = vadd.f32 %v296_v44, %v77_v36  ;;  %v298_v48 = vpop.f32.mrb[6].mxu0  ;;  %1204 = vmatpush3.bf16.msra.mxu1 %v1264_v39  ;;  %v338_v53 = vadd.f32 %v337_v49, %v85_v41  ;;  %v339_v54 = vpop.f32.mrb[6].mxu1 }
  0xfc   :  { %1183 = vmatprep.subr.bf16.mxu0 %v1265_v40  ;;  %v299_v52 = vpop.f32.mrb[7].mxu0  ;;  %1205 = vmatprep.subr.bf16.mxu1 %v1266_v42  ;;  %v340_v57 = vpop.f32.mrb[7].mxu1  ;;  %v348_v24 = vmax.f32 %v336_v19, 0.0  ;;  %v346_v7 = vmax.f32 %v295_v5, 0.0 }
  0xfd   :  { %v347_v56 = vmax.f32 %v297_v47, 0.0  ;;  %v349_v58 = vmax.f32 %v338_v53, 0.0 }
  0xfe   :  { %v356_v27 = vpack.c.bf16 %v348_v24, %v348_v24  ;;  %v354_v28 = vpack.c.bf16 %v346_v7, %v346_v7 }
  0xff   :  { %1184 = vmatpush3.bf16.msra.mxu0 %v1267_v46  ;;  %v355_v60 = vpack.c.bf16 %v347_v56, %v347_v56  ;;  %1206 = vmatpush3.bf16.msra.mxu1 %v1268_v50  ;;  %v357_v63 = vpack.c.bf16 %v349_v58, %v349_v58 }
 0x100   :  { %1185 = vmatprep.subr.bf16.mxu0 %v1269_v51  ;;  %1207 = vmatprep.subr.bf16.mxu1 %v1270_v55 }
 0x101   :  { %989 = vmatprep.mubr.bf16.mxu0 %v355_v60  ;;  %1029 = vmatprep.mubr.bf16.mxu1 %v357_v63 }
 0x103   :  { %1186 = vmatpush3.bf16.msra.mxu0 %v1271_v59  ;;  %1208 = vmatpush3.bf16.msra.mxu1 %v1272_v61 }
 0x104   :  { %1187 = vmatprep.subr.bf16.mxu0 %v1273_v62  ;;  %1209 = vmatprep.subr.bf16.mxu1 %v1274_v0 }
 0x107   :  { %1188 = vmatpush3.bf16.msra.mxu0 %v1275_v1  ;;  %1210 = vmatpush3.bf16.msra.mxu1 %v1276_v2 }
 0x108   :  { %1189 = vmatprep.subr.bf16.mxu0 %v1277_v3  ;;  %1211 = vmatprep.subr.bf16.mxu1 %v1278_v4 }
 0x10b   :  { %1190 = vmatpush3.bf16.msra.mxu0 %v1279_v6  ;;  %1212 = vmatpush3.bf16.msra.mxu1 %v1280_v9 }
 0x10c   :  { %1191 = vmatprep.subr.bf16.mxu0 %v1281_v11  ;;  %1213 = vmatprep.subr.bf16.mxu1 %v1282_v12 }
 0x10f   :  { %1192 = vmatpush3.bf16.msra.mxu0 %v1283_v13  ;;  %1214 = vmatpush3.bf16.msra.mxu1 %v1284_v16 }
 0x110   :  { %1193 = vmatprep.subr.bf16.mxu0 %v1285_v17  ;;  %1215 = vmatprep.subr.bf16.mxu1 %v1286_v18 }
 0x113   :  { %1194 = vmatpush3.bf16.msra.mxu0 %v1287_v20  ;;  %1216 = vmatpush3.bf16.msra.mxu1 %v1288_v21 }
 0x114   :  { %1195 = vmatprep.subr.bf16.mxu0 %v1289_v22  ;;  %1217 = vmatprep.subr.bf16.mxu1 %v1290_v23 }
 0x117   :  { %1196 = vmatpush3.bf16.msra.mxu0 %v1291_v25  ;;  %1218 = vmatpush3.bf16.msra.mxu1 %v1292_v26 }
 0x11a   :  { %990 = vmatmul.mubr.bf16.vlgmr.msra.gmra.mrb[12].mxu0 %v354_v28  ;;  %1030 = vmatmul.mubr.bf16.vlgmr.msra.gmra.mrb[12].mxu1 %v356_v27 }
 0x1cd   :  { %v1153_v29 = vpop.f32.mrb[8].mxu0  ;;  %v1175_v30 = vpop.f32.mrb[8].mxu1 }
 0x1ce   :  { %v1154_v32 = vpop.f32.mrb[9].mxu0  ;;  %v1176_v34 = vpop.f32.mrb[9].mxu1 }
 0x1cf   :  { %v1155_v33 = vadd.f32 %v1154_v32, %v1153_v29  ;;  %v1156_v35 = vpop.f32.mrb[10].mxu0  ;;  %v1177_v36 = vadd.f32 %v1176_v34, %v1175_v30  ;;  %v1178_v37 = vpop.f32.mrb[10].mxu1 }
 0x1d0   :  { %v1157_v38 = vpop.f32.mrb[11].mxu0  ;;  %v1179_v40 = vpop.f32.mrb[11].mxu1 }
 0x1d1   :  { %v912_v39 = vadd.f32 %v1155_v33, %v1072_v31 }
 0x1d3   :  { %v952_v41 = vadd.f32 %v1177_v36, %v912_v39 }
 0x1ed   :  { %v1197_v42 = vpop.f32.mrb[12].mxu0  ;;  %v1219_v43 = vpop.f32.mrb[12].mxu1 }
 0x1ee   :  { %v1198_v44 = vpop.f32.mrb[13].mxu0  ;;  %v1220_v46 = vpop.f32.mrb[13].mxu1 }
 0x1ef   :  { %v1199_v45 = vadd.f32 %v1198_v44, %v1197_v42  ;;  %v1200_v47 = vpop.f32.mrb[14].mxu0  ;;  %v1221_v48 = vadd.f32 %v1220_v46, %v1219_v43  ;;  %v1222_v49 = vpop.f32.mrb[14].mxu1 }
 0x1f0   :  { %v1201_v50 = vpop.f32.mrb[15].mxu0  ;;  %v1223_v52 = vpop.f32.mrb[15].mxu1 }
 0x1f1   :  { %v992_v51 = vadd.f32 %v1199_v45, %v952_v41 }
 0x1f3   :  { %v1032_v53 = vadd.f32 %v1221_v48, %v992_v51 }
 0x1f5   :  { %1037 = vmax.xlane.f32.xlu0 %v1032_v53 }
 0x282   :  { %v1038_v54 = vpop.xlane.xlu0 %1037 }
 0x283   :  { %v1039_v55 = vsub.f32 %v1032_v53, %v1038_v54 }
 0x285   :  { %v1040_v56 = vmul.f32 1.442695, %v1039_v55 }
 0x287   :  { %1293 = vpow2.f32 %v1040_v56 }
 0x291   :  { %v1294_v57 = vpop.eup %1293 }
 0x292   :  { %1042 = vadd.xlane.f32.xlu0 %v1294_v57 }
 0x31f   :  { %v1043_v58 = vpop.xlane.xlu0 %1042 }
 0x320   :  { %1295 = vrcp.f32 %v1043_v58 }
 0x32a   :  { %v1296_v59 = vpop.eup %1295 }
 0x32b   :  { %v1045_v60 = vmul.f32 %v1296_v59, %v1294_v57 }
 0x32d   :  { %1046 = vst [vmem:[%s1459_s5] sm:$0xff] %v1045_v60 }
 0x32e   :  { %1051 = vsyncpa [#allocation3], 1 }

</bundles_post_ra>
